<compile_context>
chip_gen: v7x
topology: tpu7x:2x2x1
jax: 0.10.0
libtpu: 0.0.40
codegen_flags: <defaults>
</compile_context>

<pallas_src>
import functools

import jax
import jax.numpy as jnp
from jax.experimental import pallas as pl
from jax.experimental.pallas import tpu as pltpu


def _round_up(n, m):
    return ((n + m - 1) // m) * m


def _fp_kernel(tgt_ref, x_skip_ref,                              # streamed per tile
               x_ref, pos_t4_ref, pos_sq_ref, batch_src_ref,     # resident sources
               w1a_ref, w1b_ref, b1_ref, w2_ref, b2_ref,         # resident weights
               out_ref, *, k, col_bits):
    BIG = jnp.float32(1e30)            # masked (cross-batch / padded) distance
    KNOCK = jnp.float32(1e38)          # knock-out value for already-selected keys
    TINY = jnp.float32(1e-20)          # keeps every key a *normal* float (no FTZ ties)
    clear = jnp.int32(-(1 << col_bits))  # zeroes the low `col_bits` mantissa bits

    tgt = tgt_ref[...]                 # [TY, 4] = (x, y, z, batch_id)
    bskip = tgt[:, 3:4]                # [TY, 1]
    pos_t4 = pos_t4_ref[...]           # [4, Nx]  rows 0..2 = pos^T, row 3 = 0
    ty, nx = tgt.shape[0], pos_t4.shape[1]

    # --- squared pairwise distances via |p|^2 + |q|^2 - 2 p.q (one MXU matmul) ---
    p_sq = jnp.sum(tgt * tgt, axis=-1, keepdims=True) - bskip * bskip       # [TY,1]
    cross = jnp.dot(tgt, pos_t4, preferred_element_type=jnp.float32)        # [TY,Nx]
    d2 = jnp.maximum(p_sq + pos_sq_ref[...] - 2.0 * cross, 0.0) + TINY
    d2 = jnp.where(bskip == batch_src_ref[...], d2, BIG)

    # --- pack the column index into the low mantissa bits -> one lane-min per k
    # step both selects the nearest source AND tie-breaks deterministically
    # (lowest column).  Ordering of non-negative floats == ordering of their bits.
    col = jax.lax.broadcasted_iota(jnp.int32, (ty, nx), 1)
    key = pltpu.bitcast((pltpu.bitcast(d2, jnp.int32) & clear) | col, jnp.float32)

    def select_body(_, carry):
        key_c, w_mat, denom = carry
        kmin = jnp.min(key_c, axis=-1, keepdims=True)                       # [TY,1]
        one_hot = key_c == kmin                                             # exactly 1 lane/row
        dmin = pltpu.bitcast(pltpu.bitcast(kmin, jnp.int32) & clear, jnp.float32)
        w = jnp.where(dmin < jnp.float32(1e29),
                      pl.reciprocal(jnp.maximum(dmin, jnp.float32(1e-16)), approx=True),
                      0.0)                                                  # [TY,1]
        w_mat = jnp.where(one_hot, w_mat + w, w_mat)                        # fused update
        denom = denom + w
        key_c = jnp.where(one_hot, KNOCK, key_c)
        return key_c, w_mat, denom

    init = (key,
            jnp.zeros((ty, nx), jnp.float32),
            jnp.zeros((ty, 1), jnp.float32))
    _, w_mat, denom = jax.lax.fori_loop(0, k, select_body, init, unroll=True)

    # --- weighted interpolation as a bf16 MXU matmul (f32 accumulation) ----------
    numer = jnp.dot(w_mat.astype(jnp.bfloat16), x_ref[...],
                    preferred_element_type=jnp.float32)                     # [TY,Cx]
    interp = numer * pl.reciprocal(jnp.maximum(denom, jnp.float32(1e-30)), approx=True)

    # --- MLP on cat([interp, x_skip], dim=1); BN already folded into w1/b1 -------
    h = (jnp.dot(interp.astype(jnp.bfloat16), w1a_ref[...],
                 preferred_element_type=jnp.float32)
         + jnp.dot(x_skip_ref[...], w1b_ref[...],
                   preferred_element_type=jnp.float32)
         + b1_ref[...])
    h = jnp.maximum(h, 0.0)                                                 # ReLU
    out_ref[...] = (jnp.dot(h.astype(jnp.bfloat16), w2_ref[...],
                            preferred_element_type=jnp.float32) + b2_ref[...])


def fp_module_forward(x, pos, batch, x_skip, pos_skip, batch_skip, params, k, *, ty=256):
    """Returns (features, pos_skip, batch_skip), like FPModule.forward (BN eval mode)."""
    LANE = 128
    nx, cx = x.shape
    ny, cs = x_skip.shape
    hidden = params["w1"].shape[1]
    cout = params["w2"].shape[1]

    # ---- tile / padding geometry (lane-dense, 128-padded) --------------------------
    ty = _round_up(max(8, min(ty, _round_up(ny, 8))), 8)
    ny_p = _round_up(ny, ty)
    nx_p = _round_up(nx, LANE)
    cx_p = _round_up(cx, LANE)
    cs_p = _round_up(cs, LANE)
    h_p = _round_up(hidden, LANE)
    co_p = _round_up(cout, LANE)
    assert nx_p < (1 << 23), "column index must fit in the f32 mantissa"
    col_bits = max(1, (nx_p - 1).bit_length())

    f32, bf16 = jnp.float32, jnp.bfloat16

    def pad2(a, r, c, fill=0.0):
        return jnp.pad(a, ((0, r - a.shape[0]), (0, c - a.shape[1])),
                       constant_values=fill)

    # ---- sources (VMEM-resident across the whole grid): pad Nx, batch sentinel -1 --
    x_p = pad2(x.astype(f32), nx_p, cx_p).astype(bf16)                  # [Nx_p, Cx_p] bf16
    pos_t4 = jnp.zeros((4, nx_p), f32).at[:3, :nx].set(pos.astype(f32).T)
    pos_sq = jnp.sum(pos_t4 * pos_t4, axis=0, keepdims=True)            # [1, Nx_p]
    batch_src = jnp.full((1, nx_p), -1.0, f32).at[0, :nx].set(batch.astype(f32))

    # ---- targets (streamed): batch id merged as 4th position column, sentinel -2 ---
    tgt = jnp.concatenate([pos_skip.astype(f32),
                           batch_skip.astype(f32)[:, None]], axis=1)    # [Ny, 4]
    tgt_p = jnp.zeros((ny_p, 4), f32).at[:ny].set(tgt).at[ny:, 3].set(-2.0)
    x_skip_p = pad2(x_skip.astype(f32), ny_p, cs_p).astype(bf16)        # [Ny_p, Cs_p] bf16

    # ---- fold BatchNorm1d (eval: mean=0, var=1, eps=1e-5) into Linear 1 ------------
    scale = params["gamma1"] / jnp.sqrt(1.0 + 1e-5)                     # [1, H]
    w1f = params["w1"] * scale
    b1f = params["b1"] * scale + params["beta1"]
    w1a = pad2(w1f[:cx], cx_p, h_p).astype(bf16)
    w1b = pad2(w1f[cx:], cs_p, h_p).astype(bf16)
    b1p = pad2(b1f, 1, h_p)
    w2p = pad2(params["w2"], h_p, co_p).astype(bf16)
    b2p = pad2(params["b2"], 1, co_p)

    # ---- cost estimate + VMEM budget -----------------------------------------------
    steps = ny_p // ty
    flops = steps * (2 * ty * nx_p * 4 + 6 * k * ty * nx_p + 2 * ty * nx_p * cx_p
                     + 2 * ty * (cx_p + cs_p) * h_p + 2 * ty * h_p * co_p)
    bytes_accessed = (steps * (ty * 4 * 4 + ty * cs_p * 2 + ty * co_p * 4)
                      + nx_p * cx_p * 2 + 6 * nx_p * 4
                      + (cx_p + cs_p) * h_p * 2 + h_p * co_p * 2 + (h_p + co_p) * 4)
    cost = pl.CostEstimate(flops=int(flops),
                           transcendentals=int(steps * ty * (k + 1)),
                           bytes_accessed=int(bytes_accessed))

    resident_bytes = (nx_p * cx_p * 2 + 6 * nx_p * 4
                      + (cx_p + cs_p) * h_p * 2 + h_p * co_p * 2 + (h_p + co_p) * 4)
    stream_bytes = ty * (4 * 4 + cs_p * 2 + co_p * 4)
    work_bytes = 8 * ty * nx_p * 4            # key / w_mat / one_hot temps in the k-loop
    vmem_limit = int(min(max(2 * (resident_bytes + stream_bytes) + work_bytes + (4 << 20),
                             16 << 20),
                         64 << 20))           # stays within v7x's 64 MiB/TC physical VMEM

    tiled = lambda c: pl.BlockSpec((ty, c), lambda i: (i, 0))
    resident = lambda r, c: pl.BlockSpec((r, c), lambda i: (0, 0))

    out_p = pl.pallas_call(
        functools.partial(_fp_kernel, k=k, col_bits=col_bits),
        out_shape=jax.ShapeDtypeStruct((ny_p, co_p), jnp.float32),
        grid=(steps,),
        in_specs=[
            tiled(4),                # pos_skip ++ batch_skip   (f32)
            tiled(cs_p),             # x_skip                   (bf16)
            resident(nx_p, cx_p),    # x                        (bf16)
            resident(4, nx_p),       # [pos^T ; 0]              (f32)
            resident(1, nx_p),       # |pos|^2                  (f32)
            resident(1, nx_p),       # source batch ids         (f32)
            resident(cx_p, h_p),     # w1a (BN-folded, bf16)
            resident(cs_p, h_p),     # w1b (BN-folded, bf16)
            resident(1, h_p),        # b1  (BN-folded, f32)
            resident(h_p, co_p),     # w2  (bf16)
            resident(1, co_p),       # b2  (f32)
        ],
        out_specs=tiled(co_p),
        compiler_params=pltpu.CompilerParams(
            dimension_semantics=("parallel",),
            vmem_limit_bytes=vmem_limit),
        cost_estimate=cost,
    )(tgt_p, x_skip_p, x_p, pos_t4, pos_sq, batch_src,
      w1a, w1b, b1p, w2p, b2p)

    return out_p[:ny, :cout], pos_skip, batch_skip


def init_params(key, c_interp, c_skip, hidden, c_out):
    c_in = c_interp + c_skip
    k1, k2, k3, k4 = jax.random.split(key, 4)
    w1 = jax.random.normal(k1, (c_in, hidden), jnp.float32) / jnp.sqrt(c_in)
    b1 = 0.01 * jax.random.normal(k2, (1, hidden), jnp.float32)
    w2 = jax.random.normal(k3, (hidden, c_out), jnp.float32) / jnp.sqrt(hidden)
    b2 = 0.01 * jax.random.normal(k4, (1, c_out), jnp.float32)
    return dict(
        w1=w1, b1=b1,
        gamma1=jnp.ones((1, hidden), jnp.float32),
        beta1=jnp.zeros((1, hidden), jnp.float32),
        w2=w2, b2=b2,
    )


def ref_forward(x, pos, batch, x_skip, pos_skip, batch_skip, params, k):
    """Pure-JAX f32 reference (gather-based knn_interpolate + Linear/BN/ReLU/Linear)."""
    d2 = jnp.sum((pos_skip[:, None, :] - pos[None, :, :]) ** 2, axis=-1)
    d2 = jnp.where(batch_skip[:, None] == batch[None, :], d2, jnp.inf)
    neg_d, idx = jax.lax.top_k(-d2, k)
    d = -neg_d
    w = 1.0 / jnp.maximum(d, 1e-16)
    interp = jnp.einsum('nk,nkc->nc', w, x[idx]) / jnp.sum(w, -1, keepdims=True)
    feat = jnp.concatenate([interp, x_skip], axis=1)
    h = feat @ params["w1"] + params["b1"]
    h = params["gamma1"] * (h / jnp.sqrt(1.0 + 1e-5)) + params["beta1"]
    h = jnp.maximum(h, 0.0)
    return h @ params["w2"] + params["b2"]


if __name__ == "__main__":
    key = jax.random.PRNGKey(0)
    k_pos, k_poss, k_x, k_xs, k_par = jax.random.split(key, 5)

    # Small shapes: 2 "graphs" in the batch, 8 coarse / 16 fine points total.
    NX, NY = 8, 16          # coarse (source) / fine (target) point counts
    CX, CS = 4, 4           # interpolated-feature / skip-feature channels
    HIDDEN, COUT = 32, 32   # MLP([CX+CS, HIDDEN, COUT])
    K = 3

    pos = jax.random.uniform(k_pos, (NX, 3), jnp.float32)
    pos_skip = jax.random.uniform(k_poss, (NY, 3), jnp.float32)
    x = jax.random.normal(k_x, (NX, CX), jnp.float32)
    x_skip = jax.random.normal(k_xs, (NY, CS), jnp.float32)
    batch = jnp.concatenate([jnp.zeros(NX // 2, jnp.int32), jnp.ones(NX // 2, jnp.int32)])
    batch_skip = jnp.concatenate([jnp.zeros(NY // 2, jnp.int32), jnp.ones(NY // 2, jnp.int32)])

    params = init_params(k_par, CX, CS, HIDDEN, COUT)

    # TY=8 exercises a 2-step grid at these toy sizes; use 128 (v7x) / 256-512
    # (v5e/v6e, Nx-dependent) for real point clouds.
    out, pos_out, batch_out = fp_module_forward(
        x, pos, batch, x_skip, pos_skip, batch_skip, params, K, ty=8)
    out = jax.block_until_ready(out)

    ref = ref_forward(x, pos, batch, x_skip, pos_skip, batch_skip, params, K)
    assert out.shape == (NY, COUT)
    assert bool(jnp.all(jnp.isfinite(out)))
    # bf16 matmuls (incl. the interpolation) + approx EUP reciprocals vs. an
    # exact f32 reference -> bf16-appropriate tolerance.
    assert bool(jnp.allclose(out, ref, rtol=3e-2, atol=3e-2)), "mismatch vs reference"

    print("KERNEL_OK")
</pallas_src>

<mosaic_0001>
module attributes {stable_mosaic.version = 11 : i64} {
  func.func @_fp_kernel(%arg0: i32, %arg1: memref<8x4xf32, #tpu.memory_space<vmem>>, %arg2: memref<8x128xbf16, #tpu.memory_space<vmem>>, %arg3: memref<128x128xbf16, #tpu.memory_space<vmem>>, %arg4: memref<4x128xf32, #tpu.memory_space<vmem>>, %arg5: memref<1x128xf32, #tpu.memory_space<vmem>>, %arg6: memref<1x128xf32, #tpu.memory_space<vmem>>, %arg7: memref<128x128xbf16, #tpu.memory_space<vmem>>, %arg8: memref<128x128xbf16, #tpu.memory_space<vmem>>, %arg9: memref<1x128xf32, #tpu.memory_space<vmem>>, %arg10: memref<128x128xbf16, #tpu.memory_space<vmem>>, %arg11: memref<1x128xf32, #tpu.memory_space<vmem>>, %arg12: memref<8x128xf32, #tpu.memory_space<vmem>>) attributes {dimension_semantics = [#tpu.dimension_semantics<parallel>], iteration_bounds = array<i64: 2>, scalar_prefetch = 0 : i64, scratch_operands = 0 : i64, tpu.core_type = #tpu.core_type<tc>, window_params = [{transform_indices = @transform_0, window_bounds = array<i64: 8, 4>}, {transform_indices = @transform_1, window_bounds = array<i64: 8, 128>}, {pipeline_mode = #tpu.pipeline_mode<synchronous>, transform_indices = @transform_2, window_bounds = array<i64: 128, 128>}, {pipeline_mode = #tpu.pipeline_mode<synchronous>, transform_indices = @transform_3, window_bounds = array<i64: 4, 128>}, {pipeline_mode = #tpu.pipeline_mode<synchronous>, transform_indices = @transform_4, window_bounds = array<i64: 1, 128>}, {pipeline_mode = #tpu.pipeline_mode<synchronous>, transform_indices = @transform_5, window_bounds = array<i64: 1, 128>}, {pipeline_mode = #tpu.pipeline_mode<synchronous>, transform_indices = @transform_6, window_bounds = array<i64: 128, 128>}, {pipeline_mode = #tpu.pipeline_mode<synchronous>, transform_indices = @transform_7, window_bounds = array<i64: 128, 128>}, {pipeline_mode = #tpu.pipeline_mode<synchronous>, transform_indices = @transform_8, window_bounds = array<i64: 1, 128>}, {pipeline_mode = #tpu.pipeline_mode<synchronous>, transform_indices = @transform_9, window_bounds = array<i64: 128, 128>}, {pipeline_mode = #tpu.pipeline_mode<synchronous>, transform_indices = @transform_10, window_bounds = array<i64: 1, 128>}, {transform_indices = @transform_11, window_bounds = array<i64: 8, 128>}]} {
    %c0 = arith.constant 0 : index
    %c0_0 = arith.constant 0 : index
    %0 = vector.load %arg1[%c0, %c0_0] : memref<8x4xf32, #tpu.memory_space<vmem>>, vector<8x4xf32>
    %1 = vector.extract_strided_slice %0 {offsets = [0, 3], sizes = [8, 1], strides = [1, 1]} : vector<8x4xf32> to vector<8x1xf32>
    %c0_1 = arith.constant 0 : index
    %c0_2 = arith.constant 0 : index
    %2 = vector.load %arg4[%c0_1, %c0_2] : memref<4x128xf32, #tpu.memory_space<vmem>>, vector<4x128xf32>
    %3 = arith.mulf %0, %0 : vector<8x4xf32>
    %cst = arith.constant dense<0.000000e+00> : vector<8xf32>
    %4 = vector.multi_reduction <add>, %3, %cst [1] : vector<8x4xf32> to vector<8xf32>
    %5 = vector.shape_cast %4 : vector<8xf32> to vector<8x1xf32>
    %6 = arith.mulf %1, %1 : vector<8x1xf32>
    %7 = arith.subf %5, %6 : vector<8x1xf32>
    %cst_3 = arith.constant dense<0.000000e+00> : vector<8x128xf32>
    %8 = tpu.matmul %0, %2, %cst_3 {dimension_numbers = #tpu.dot_dimension_numbers<[1], [0], [0], [1], [0, 0, 1, 1], [], []>} : vector<8x4xf32>, vector<4x128xf32>, vector<8x128xf32> -> vector<8x128xf32>
    %c0_4 = arith.constant 0 : index
    %c0_5 = arith.constant 0 : index
    %9 = vector.load %arg5[%c0_4, %c0_5] : memref<1x128xf32, #tpu.memory_space<vmem>>, vector<1x128xf32>
    %10 = vector.broadcast %7 : vector<8x1xf32> to vector<8x128xf32>
    %11 = vector.broadcast %9 : vector<1x128xf32> to vector<8x128xf32>
    %12 = arith.addf %10, %11 : vector<8x128xf32>
    %cst_6 = arith.constant 2.000000e+00 : f32
    %13 = vector.broadcast %cst_6 : f32 to vector<8x128xf32>
    %14 = arith.mulf %13, %8 : vector<8x128xf32>
    %15 = arith.subf %12, %14 : vector<8x128xf32>
    %cst_7 = arith.constant 0.000000e+00 : f32
    %16 = vector.broadcast %cst_7 : f32 to vector<8x128xf32>
    %17 = arith.maximumf %15, %16 : vector<8x128xf32>
    %cst_8 = arith.constant 9.99999968E-21 : f32
    %18 = vector.broadcast %cst_8 : f32 to vector<8x128xf32>
    %19 = arith.addf %17, %18 : vector<8x128xf32>
    %c0_9 = arith.constant 0 : index
    %c0_10 = arith.constant 0 : index
    %20 = vector.load %arg6[%c0_9, %c0_10] : memref<1x128xf32, #tpu.memory_space<vmem>>, vector<1x128xf32>
    %21 = vector.broadcast %1 : vector<8x1xf32> to vector<8x128xf32>
    %22 = vector.broadcast %20 : vector<1x128xf32> to vector<8x128xf32>
    %23 = arith.cmpf oeq, %21, %22 : vector<8x128xf32>
    %cst_11 = arith.constant 1.000000e+30 : f32
    %24 = vector.broadcast %cst_11 : f32 to vector<8x128xf32>
    %25 = arith.select %23, %19, %24 : vector<8x128xi1>, vector<8x128xf32>
    %26 = tpu.iota {dimensions = array<i32: 1>} : vector<8x128xi32>
    %27 = tpu.bitcast %25 : vector<8x128xf32> -> vector<8x128xi32>
    %c-128_i32 = arith.constant -128 : i32
    %28 = vector.broadcast %c-128_i32 : i32 to vector<8x128xi32>
    %29 = arith.andi %27, %28 : vector<8x128xi32>
    %30 = arith.ori %29, %26 : vector<8x128xi32>
    %31 = tpu.bitcast %30 : vector<8x128xi32> -> vector<8x128xf32>
    %cst_12 = arith.constant 0.000000e+00 : f32
    %32 = vector.broadcast %cst_12 : f32 to vector<8x128xf32>
    %cst_13 = arith.constant 0.000000e+00 : f32
    %33 = vector.broadcast %cst_13 : f32 to vector<8x1xf32>
    %c-128_i32_14 = arith.constant -128 : i32
    %cst_15 = arith.constant 9.99999968E+37 : f32
    %c0_i32 = arith.constant 0 : i32
    %cst_16 = arith.constant dense<0x7F800000> : vector<8xf32>
    %34 = vector.multi_reduction <minimumf>, %31, %cst_16 [1] : vector<8x128xf32> to vector<8xf32>
    %35 = vector.shape_cast %34 : vector<8xf32> to vector<8x1xf32>
    %36 = vector.broadcast %35 : vector<8x1xf32> to vector<8x128xf32>
    %37 = arith.cmpf oeq, %31, %36 : vector<8x128xf32>
    %38 = tpu.bitcast %35 : vector<8x1xf32> -> vector<8x1xi32>
    %39 = vector.broadcast %c-128_i32_14 : i32 to vector<8x1xi32>
    %40 = arith.andi %38, %39 : vector<8x1xi32>
    %41 = tpu.bitcast %40 : vector<8x1xi32> -> vector<8x1xf32>
    %cst_17 = arith.constant 1.000000e+29 : f32
    %42 = vector.broadcast %cst_17 : f32 to vector<8x1xf32>
    %43 = arith.cmpf olt, %41, %42 : vector<8x1xf32>
    %cst_18 = arith.constant 1.000000e-16 : f32
    %44 = vector.broadcast %cst_18 : f32 to vector<8x1xf32>
    %45 = arith.maximumf %41, %44 : vector<8x1xf32>
    %46 = tpu.reciprocal %45 {approx = true} : vector<8x1xf32> -> vector<8x1xf32>
    %cst_19 = arith.constant 0.000000e+00 : f32
    %47 = vector.broadcast %cst_19 : f32 to vector<8x1xf32>
    %48 = arith.select %43, %46, %47 : vector<8x1xi1>, vector<8x1xf32>
    %49 = vector.broadcast %48 : vector<8x1xf32> to vector<8x128xf32>
    %50 = arith.addf %32, %49 : vector<8x128xf32>
    %51 = arith.select %37, %50, %32 : vector<8x128xi1>, vector<8x128xf32>
    %52 = arith.addf %33, %48 : vector<8x1xf32>
    %53 = vector.broadcast %cst_15 : f32 to vector<8x128xf32>
    %54 = arith.select %37, %53, %31 : vector<8x128xi1>, vector<8x128xf32>
    %c1_i32 = arith.constant 1 : i32
    %cst_20 = arith.constant dense<0x7F800000> : vector<8xf32>
    %55 = vector.multi_reduction <minimumf>, %54, %cst_20 [1] : vector<8x128xf32> to vector<8xf32>
    %56 = vector.shape_cast %55 : vector<8xf32> to vector<8x1xf32>
    %57 = vector.broadcast %56 : vector<8x1xf32> to vector<8x128xf32>
    %58 = arith.cmpf oeq, %54, %57 : vector<8x128xf32>
    %59 = tpu.bitcast %56 : vector<8x1xf32> -> vector<8x1xi32>
    %60 = vector.broadcast %c-128_i32_14 : i32 to vector<8x1xi32>
    %61 = arith.andi %59, %60 : vector<8x1xi32>
    %62 = tpu.bitcast %61 : vector<8x1xi32> -> vector<8x1xf32>
    %cst_21 = arith.constant 1.000000e+29 : f32
    %63 = vector.broadcast %cst_21 : f32 to vector<8x1xf32>
    %64 = arith.cmpf olt, %62, %63 : vector<8x1xf32>
    %cst_22 = arith.constant 1.000000e-16 : f32
    %65 = vector.broadcast %cst_22 : f32 to vector<8x1xf32>
    %66 = arith.maximumf %62, %65 : vector<8x1xf32>
    %67 = tpu.reciprocal %66 {approx = true} : vector<8x1xf32> -> vector<8x1xf32>
    %cst_23 = arith.constant 0.000000e+00 : f32
    %68 = vector.broadcast %cst_23 : f32 to vector<8x1xf32>
    %69 = arith.select %64, %67, %68 : vector<8x1xi1>, vector<8x1xf32>
    %70 = vector.broadcast %69 : vector<8x1xf32> to vector<8x128xf32>
    %71 = arith.addf %51, %70 : vector<8x128xf32>
    %72 = arith.select %58, %71, %51 : vector<8x128xi1>, vector<8x128xf32>
    %73 = arith.addf %52, %69 : vector<8x1xf32>
    %74 = vector.broadcast %cst_15 : f32 to vector<8x128xf32>
    %75 = arith.select %58, %74, %54 : vector<8x128xi1>, vector<8x128xf32>
    %c2_i32 = arith.constant 2 : i32
    %cst_24 = arith.constant dense<0x7F800000> : vector<8xf32>
    %76 = vector.multi_reduction <minimumf>, %75, %cst_24 [1] : vector<8x128xf32> to vector<8xf32>
    %77 = vector.shape_cast %76 : vector<8xf32> to vector<8x1xf32>
    %78 = vector.broadcast %77 : vector<8x1xf32> to vector<8x128xf32>
    %79 = arith.cmpf oeq, %75, %78 : vector<8x128xf32>
    %80 = tpu.bitcast %77 : vector<8x1xf32> -> vector<8x1xi32>
    %81 = vector.broadcast %c-128_i32_14 : i32 to vector<8x1xi32>
    %82 = arith.andi %80, %81 : vector<8x1xi32>
    %83 = tpu.bitcast %82 : vector<8x1xi32> -> vector<8x1xf32>
    %cst_25 = arith.constant 1.000000e+29 : f32
    %84 = vector.broadcast %cst_25 : f32 to vector<8x1xf32>
    %85 = arith.cmpf olt, %83, %84 : vector<8x1xf32>
    %cst_26 = arith.constant 1.000000e-16 : f32
    %86 = vector.broadcast %cst_26 : f32 to vector<8x1xf32>
    %87 = arith.maximumf %83, %86 : vector<8x1xf32>
    %88 = tpu.reciprocal %87 {approx = true} : vector<8x1xf32> -> vector<8x1xf32>
    %cst_27 = arith.constant 0.000000e+00 : f32
    %89 = vector.broadcast %cst_27 : f32 to vector<8x1xf32>
    %90 = arith.select %85, %88, %89 : vector<8x1xi1>, vector<8x1xf32>
    %91 = vector.broadcast %90 : vector<8x1xf32> to vector<8x128xf32>
    %92 = arith.addf %72, %91 : vector<8x128xf32>
    %93 = arith.select %79, %92, %72 : vector<8x128xi1>, vector<8x128xf32>
    %94 = arith.addf %73, %90 : vector<8x1xf32>
    %95 = vector.broadcast %cst_15 : f32 to vector<8x128xf32>
    %96 = arith.select %79, %95, %75 : vector<8x128xi1>, vector<8x128xf32>
    %97 = arith.truncf %93 : vector<8x128xf32> to vector<8x128xbf16>
    %c0_28 = arith.constant 0 : index
    %c0_29 = arith.constant 0 : index
    %98 = vector.load %arg3[%c0_28, %c0_29] : memref<128x128xbf16, #tpu.memory_space<vmem>>, vector<128x128xbf16>
    %cst_30 = arith.constant dense<0.000000e+00> : vector<8x128xf32>
    %99 = tpu.matmul %97, %98, %cst_30 {dimension_numbers = #tpu.dot_dimension_numbers<[1], [0], [0], [1], [0, 0, 1, 1], [], []>} : vector<8x128xbf16>, vector<128x128xbf16>, vector<8x128xf32> -> vector<8x128xf32>
    %cst_31 = arith.constant 1.000000e-30 : f32
    %100 = vector.broadcast %cst_31 : f32 to vector<8x1xf32>
    %101 = arith.maximumf %94, %100 : vector<8x1xf32>
    %102 = tpu.reciprocal %101 {approx = true} : vector<8x1xf32> -> vector<8x1xf32>
    %103 = vector.broadcast %102 : vector<8x1xf32> to vector<8x128xf32>
    %104 = arith.mulf %99, %103 : vector<8x128xf32>
    %105 = arith.truncf %104 : vector<8x128xf32> to vector<8x128xbf16>
    %c0_32 = arith.constant 0 : index
    %c0_33 = arith.constant 0 : index
    %106 = vector.load %arg7[%c0_32, %c0_33] : memref<128x128xbf16, #tpu.memory_space<vmem>>, vector<128x128xbf16>
    %cst_34 = arith.constant dense<0.000000e+00> : vector<8x128xf32>
    %107 = tpu.matmul %105, %106, %cst_34 {dimension_numbers = #tpu.dot_dimension_numbers<[1], [0], [0], [1], [0, 0, 1, 1], [], []>} : vector<8x128xbf16>, vector<128x128xbf16>, vector<8x128xf32> -> vector<8x128xf32>
    %c0_35 = arith.constant 0 : index
    %c0_36 = arith.constant 0 : index
    %108 = vector.load %arg2[%c0_35, %c0_36] : memref<8x128xbf16, #tpu.memory_space<vmem>>, vector<8x128xbf16>
    %c0_37 = arith.constant 0 : index
    %c0_38 = arith.constant 0 : index
    %109 = vector.load %arg8[%c0_37, %c0_38] : memref<128x128xbf16, #tpu.memory_space<vmem>>, vector<128x128xbf16>
    %cst_39 = arith.constant dense<0.000000e+00> : vector<8x128xf32>
    %110 = tpu.matmul %108, %109, %cst_39 {dimension_numbers = #tpu.dot_dimension_numbers<[1], [0], [0], [1], [0, 0, 1, 1], [], []>} : vector<8x128xbf16>, vector<128x128xbf16>, vector<8x128xf32> -> vector<8x128xf32>
    %111 = arith.addf %107, %110 : vector<8x128xf32>
    %c0_40 = arith.constant 0 : index
    %c0_41 = arith.constant 0 : index
    %112 = vector.load %arg9[%c0_40, %c0_41] : memref<1x128xf32, #tpu.memory_space<vmem>>, vector<1x128xf32>
    %113 = vector.broadcast %112 : vector<1x128xf32> to vector<8x128xf32>
    %114 = arith.addf %111, %113 : vector<8x128xf32>
    %cst_42 = arith.constant 0.000000e+00 : f32
    %115 = vector.broadcast %cst_42 : f32 to vector<8x128xf32>
    %116 = arith.maximumf %114, %115 : vector<8x128xf32>
    %117 = arith.truncf %116 : vector<8x128xf32> to vector<8x128xbf16>
    %c0_43 = arith.constant 0 : index
    %c0_44 = arith.constant 0 : index
    %118 = vector.load %arg10[%c0_43, %c0_44] : memref<128x128xbf16, #tpu.memory_space<vmem>>, vector<128x128xbf16>
    %cst_45 = arith.constant dense<0.000000e+00> : vector<8x128xf32>
    %119 = tpu.matmul %117, %118, %cst_45 {dimension_numbers = #tpu.dot_dimension_numbers<[1], [0], [0], [1], [0, 0, 1, 1], [], []>} : vector<8x128xbf16>, vector<128x128xbf16>, vector<8x128xf32> -> vector<8x128xf32>
    %c0_46 = arith.constant 0 : index
    %c0_47 = arith.constant 0 : index
    %120 = vector.load %arg11[%c0_46, %c0_47] : memref<1x128xf32, #tpu.memory_space<vmem>>, vector<1x128xf32>
    %121 = vector.broadcast %120 : vector<1x128xf32> to vector<8x128xf32>
    %122 = arith.addf %119, %121 : vector<8x128xf32>
    %c0_48 = arith.constant 0 : index
    %c0_49 = arith.constant 0 : index
    %123 = vector.load %arg12[%c0_48, %c0_49] : memref<8x128xf32, #tpu.memory_space<vmem>>, vector<8x128xf32>
    tpu.vector_store %arg12[%c0_48, %c0_49], %122 {strides = array<i32>} : memref<8x128xf32, #tpu.memory_space<vmem>>, vector<8x128xf32>,
    return
  }
  func.func @transform_0(%arg0: i32) -> (i32, i32) {
    %c0_i32 = arith.constant 0 : i32
    %c0_i32_0 = arith.constant 0 : i32
    return %arg0, %c0_i32 : i32, i32
  }
  func.func @transform_1(%arg0: i32) -> (i32, i32) {
    %c0_i32 = arith.constant 0 : i32
    %c0_i32_0 = arith.constant 0 : i32
    return %arg0, %c0_i32 : i32, i32
  }
  func.func @transform_2(%arg0: i32) -> (i32, i32) {
    %c0_i32 = arith.constant 0 : i32
    %c0_i32_0 = arith.constant 0 : i32
    %c0_i32_1 = arith.constant 0 : i32
    return %c0_i32, %c0_i32_0 : i32, i32
  }
  func.func @transform_3(%arg0: i32) -> (i32, i32) {
    %c0_i32 = arith.constant 0 : i32
    %c0_i32_0 = arith.constant 0 : i32
    %c0_i32_1 = arith.constant 0 : i32
    return %c0_i32, %c0_i32_0 : i32, i32
  }
  func.func @transform_4(%arg0: i32) -> (i32, i32) {
    %c0_i32 = arith.constant 0 : i32
    %c0_i32_0 = arith.constant 0 : i32
    %c0_i32_1 = arith.constant 0 : i32
    return %c0_i32, %c0_i32_0 : i32, i32
  }
  func.func @transform_5(%arg0: i32) -> (i32, i32) {
    %c0_i32 = arith.constant 0 : i32
    %c0_i32_0 = arith.constant 0 : i32
    %c0_i32_1 = arith.constant 0 : i32
    return %c0_i32, %c0_i32_0 : i32, i32
  }
  func.func @transform_6(%arg0: i32) -> (i32, i32) {
    %c0_i32 = arith.constant 0 : i32
    %c0_i32_0 = arith.constant 0 : i32
    %c0_i32_1 = arith.constant 0 : i32
    return %c0_i32, %c0_i32_0 : i32, i32
  }
  func.func @transform_7(%arg0: i32) -> (i32, i32) {
    %c0_i32 = arith.constant 0 : i32
    %c0_i32_0 = arith.constant 0 : i32
    %c0_i32_1 = arith.constant 0 : i32
    return %c0_i32, %c0_i32_0 : i32, i32
  }
  func.func @transform_8(%arg0: i32) -> (i32, i32) {
    %c0_i32 = arith.constant 0 : i32
    %c0_i32_0 = arith.constant 0 : i32
    %c0_i32_1 = arith.constant 0 : i32
    return %c0_i32, %c0_i32_0 : i32, i32
  }
  func.func @transform_9(%arg0: i32) -> (i32, i32) {
    %c0_i32 = arith.constant 0 : i32
    %c0_i32_0 = arith.constant 0 : i32
    %c0_i32_1 = arith.constant 0 : i32
    return %c0_i32, %c0_i32_0 : i32, i32
  }
  func.func @transform_10(%arg0: i32) -> (i32, i32) {
    %c0_i32 = arith.constant 0 : i32
    %c0_i32_0 = arith.constant 0 : i32
    %c0_i32_1 = arith.constant 0 : i32
    return %c0_i32, %c0_i32_0 : i32, i32
  }
  func.func @transform_11(%arg0: i32) -> (i32, i32) {
    %c0_i32 = arith.constant 0 : i32
    %c0_i32_0 = arith.constant 0 : i32
    return %arg0, %c0_i32 : i32, i32
  }
}

</mosaic_0001>

<bundles_post_ra>
// kernel: tpu_custom_call.1
= control target key start
LH: loop header
LB: loop body
LE: loop exit
PB: predicated region body
PF: predicated region fallthrough
CT: control target
= control target key end

     0   :  { %s2056_s0 = inlined_call_operand.vmem [shape: f32[16,4], index: 0, kind: input, shape index: {}]   ;;  %s2057_s1 = inlined_call_operand.vmem [shape: bf16[16,128], index: 1, kind: input, shape index: {}]   ;;  %s2058_s2 = inlined_call_operand.hbm [shape: bf16[128,128], index: 2, kind: input, shape index: {}]   ;;  %s2059_s3 = inlined_call_operand.vmem [shape: f32[4,128], index: 3, kind: input, shape index: {}]   ;;  %s2060_s4 = inlined_call_operand.vmem [shape: f32[1,128], index: 4, kind: input, shape index: {}]   ;;  %s2061_s5 = inlined_call_operand.vmem [shape: f32[1,128], index: 5, kind: input, shape index: {}]   ;;  %s2062_s6 = inlined_call_operand.hbm [shape: bf16[128,128], index: 6, kind: input, shape index: {}]   ;;  %s2063_s7 = inlined_call_operand.hbm [shape: bf16[128,128], index: 7, kind: input, shape index: {}]   ;;  %s2064_s8 = inlined_call_operand.vmem [shape: f32[1,128], index: 8, kind: input, shape index: {}]   ;;  %s2065_s9 = inlined_call_operand.hbm [shape: bf16[128,128], index: 9, kind: input, shape index: {}]   ;;  %s2066_s10 = inlined_call_operand.vmem [shape: f32[1,128], index: 10, kind: input, shape index: {}]   ;;  %s2067_s11 = inlined_call_operand.hbm [shape: f32[16,128], index: 11, kind: output, shape index: {}]  }
   0x1   :  { %2078 = sst [smem:[#allocation21_spill]] %s2067_s11 }
   0x2   :  { %16 = vsyncpa [#allocation3], 0 }
   0x3   :  { %17 = vsyncpa [#allocation6], 0 }
   0x4   :  { %18 = vsyncpa [#allocation9], 0 }
   0x5   :  { %19 = vsyncpa [#allocation4], 0 }
   0x6   :  { %21 = vsyncpa [#allocation4 + $0x1], 0  ;;  %s1751_s17 = smov 0   ;;  %s1753_s18 = smov 0  }
   0x7   :  { %s1755_s19 = smov 0   ;;  %s1757_s20 = smov 0  }
   0x8 LB: > { %2079 = sst [smem:[#allocation15_spill]] %s1667_s17  ;;  %s1772_s21 = sadd.s32 4294967295, %s1679_s20   ;;  %s1679_s20 = sphi %s1757_s20, %s2103_s20   ;;  %s1675_s19 = sphi %s1755_s19, %s2108_s19   ;;  %s1671_s18 = sphi %s1753_s18, %s2107_s18   ;;  %s1667_s17 = sphi %s1751_s17, %s2106_s17  }
   0x9   : > { %2080 = sst [smem:[#allocation16_spill]] %s1675_s19  ;;  %s1186_s22 = sadd.s32 4294967294, %s1679_s20  }
   0xa   : > { %2081 = sst [smem:[#allocation17_spill]] %s1679_s20  ;;  %s1776_s23 = sadd.s32 1, %s1679_s20  }
   0xb   : > { %2082 = sst [smem:[#allocation18_spill]] %s1776_s23  ;;  %s275_s24 = sadd.s32 1, %s1675_s19 }
   0xc   : > { %s272_s25 = ssub.s32 %s1679_s20, %s1776_s23  ;;  %p285_p0 = scmp.ne.s32.totalorder %s1675_s19, %s1671_s18 }
   0xd   : > { %p273_p1 = scmp.eq.s32.totalorder %s272_s25, 0  ;;  %p286_p2 = scmp.eq.s32.totalorder %s1772_s21, 1 }
   0xe   : > { %p291_p3 = scmp.ne.s32.totalorder %s1671_s18, %s1667_s17  ;;  %p292_p4 = scmp.eq.s32.totalorder %s1186_s22, 1 }
   0xf   : > { %s1787_s26 = scalar_select %p273_p1, %s1675_s19, %s275_s24  }
  0x10   : > { %p1789_p5 = por %p286_p2, %p285_p0  ;;  %p1793_p6 = por %p292_p4, %p291_p3 }
  0x11   : > { %2083 = sst [smem:[#allocation19_spill]] %s1787_s26  ;;  %p1187_p7 = scmp.ge.s32.totalorder %s1679_s20, 1 }
  0x12   : > { %s2084_s27 = scalar_select %p1789_p5, 1, 0 }
  0x13   : > { %s2085_s28 = scalar_select %p1793_p6, 1, 0 }
  0x14   : > { %p299_p8 = scmp.lt.s32.totalorder %s1679_s20, 3  ;;  %p2071_p9 = scmp.eq.s32.totalorder %s1772_s21, 0 }
  0x15   : > { %2086 = sst [smem:[#allocation20_spill]] %s2085_s28  ;;  %s1681_s30 = smov [#allocation5]  }
  0x16   : > { %p1800_p10 = pnand %p1187_p7, %p299_p8  ;;  %s333_s12 = sshll.u32 %s1681_s30, 4  ;;  %s1806_s12 = int_to_ptr.vmem [resolvable:$true] %s333_s12 }
  0x17   : > { %s1682_s14 = smov [#allocation2]   ;;  %s1683_s16 = smov [#allocation7]  }
  0x18   : > { %s2087_s29 = scalar_select %p1800_p10, 1, 0 }
  0x19   : > { %p1384_p11 = pneg %p1800_p10  ;;  %s311_s15 = sshll.u32 %s1682_s14, 4  ;;  %s1814_s15 = int_to_ptr.vmem [resolvable:$true] %s311_s15 }
  0x1a   : > { %s1816_s22 = sshll.u32 %s1683_s16, 4  ;;  %s1493_s26 = scalar_lea.hbm %s2062_s6, 1024  ;;  %s347_s22 = int_to_ptr.vmem [resolvable:$true] %s1816_s22 }
  0x1b   : > { %p1810_p12 = pnand %p2071_p9, %p1384_p11  ;;  %p1494_p13 = scmp.ne.s32.totalorder %s2062_s6, %s1493_s26 }
  0x1c   : > { %p1500_p3 = scmp.lt.u32.totalorder %s1493_s26, %s2062_s6 }
  0x1d   : > { %p1826_p0 = pneg %p1810_p12 }
  0x1f   : > { %p1496_p1 = pnand %p1826_p0, %p1494_p13 }
  0x21   : > { %p1497_p2 = pneg %p1496_p1 }
  0x23   : > { %p1502_p4 = pnand %p1500_p3, %p1497_p2 }
  0x25   : > { %1505 = shalt.err (!%p1502_p4)
}
  0x26   : > { %s1506_s19 = scalar_lea.vmem %s1806_s12, 1024  ;;  %p1514_p9 = scmp.lt.s32.totalorder %s1806_s12, %s1806_s12 }
  0x27   : > { %p1507_p7 = scmp.ne.s32.totalorder %s1806_s12, %s1506_s19  ;;  %p1515_p6 = scmp.lt.s32.totalorder %s1506_s19, %s1506_s19 }
  0x29   : > { %p1509_p8 = pnand %p1507_p7, %p1826_p0  ;;  %p1516_p13 = por %p1515_p6, %p1514_p9 }
  0x2b   : > { %p1510_p11 = pneg %p1509_p8 }
  0x2d   : > { %p1517_p1 = pnand %p1516_p13, %p1510_p11 }
  0x2f   : > { %1520 = shalt.err (!%p1517_p1)
}
  0x30   : > { %s1684_s24 = smov 64   ;;  %s1685_s26 = smov 4  }
  0x31   : > { %1390 = dma.hbm_to_vmem [thread:$0]  (!%p1810_p12), %s2062_s6, 1024, %s1806_s12, [#allocation6], %s1684_s24, %s1684_s24, %s1685_s26  }
  0x32   : > { %s1521_s19 = scalar_lea.hbm %s2058_s2, 1024 }
  0x33   : > { %p1522_p6 = scmp.ne.s32.totalorder %s2058_s2, %s1521_s19  ;;  %p1528_p3 = scmp.lt.u32.totalorder %s1521_s19, %s2058_s2 }
  0x35   : > { %p1524_p9 = pnand %p1522_p6, %p1826_p0 }
  0x37   : > { %p1525_p2 = pneg %p1524_p9 }
  0x39   : > { %p1530_p4 = pnand %p1528_p3, %p1525_p2 }
  0x3b   : > { %1533 = shalt.err (!%p1530_p4)
}
  0x3c   : > { %s1534_s12 = scalar_lea.vmem %s1814_s15, 1024  ;;  %p1542_p13 = scmp.lt.s32.totalorder %s1814_s15, %s1814_s15 }
  0x3d   : > { %p1535_p7 = scmp.ne.s32.totalorder %s1814_s15, %s1534_s12  ;;  %p1543_p1 = scmp.lt.s32.totalorder %s1534_s12, %s1534_s12 }
  0x3f   : > { %p1537_p8 = pnand %p1535_p7, %p1826_p0  ;;  %p1544_p6 = por %p1543_p1, %p1542_p13 }
  0x41   : > { %p1538_p11 = pneg %p1537_p8 }
  0x43   : > { %p1545_p9 = pnand %p1544_p6, %p1538_p11 }
  0x45   : > { %1548 = shalt.err (!%p1545_p9)
}
  0x46   : > { %1387 = dma.hbm_to_vmem [thread:$0]  (!%p1810_p12), %s2058_s2, 1024, %s1814_s15, [#allocation3], %s1684_s24, %s1684_s24, %s1685_s26  }
  0x47   : > { %s1549_s25 = scalar_lea.hbm %s2063_s7, 1024 }
  0x48   : > { %p1550_p2 = scmp.ne.s32.totalorder %s2063_s7, %s1549_s25  ;;  %p1556_p7 = scmp.lt.u32.totalorder %s1549_s25, %s2063_s7 }
  0x4a   : > { %p1552_p3 = pnand %p1550_p2, %p1826_p0 }
  0x4c   : > { %p1553_p4 = pneg %p1552_p3 }
  0x4e   : > { %p1558_p8 = pnand %p1556_p7, %p1553_p4 }
  0x50   : > { %1561 = shalt.err (!%p1558_p8)
}
  0x51   : > { %s1562_s12 = scalar_lea.vmem %s347_s22, 1024  ;;  %p1570_p6 = scmp.lt.s32.totalorder %s347_s22, %s347_s22 }
  0x52   : > { %p1563_p11 = scmp.ne.s32.totalorder %s347_s22, %s1562_s12  ;;  %p1571_p9 = scmp.lt.s32.totalorder %s1562_s12, %s1562_s12 }
  0x54   : > { %p1565_p13 = pnand %p1563_p11, %p1826_p0  ;;  %p1572_p5 = por %p1571_p9, %p1570_p6 }
  0x56   : > { %p1566_p1 = pneg %p1565_p13 }
  0x58   : > { %p1573_p10 = pnand %p1572_p5, %p1566_p1 }
  0x5a   : > { %1576 = shalt.err (!%p1573_p10)
}
  0x5b   : > { %1393 = dma.hbm_to_vmem [thread:$0]  (!%p1810_p12), %s2063_s7, 1024, %s347_s22, [#allocation6], %s1684_s24, %s1684_s24, %s1685_s26  }
  0x5c   : > { %s1686_s17 = smov [#allocation8]   ;;  %s1577_s30 = scalar_lea.hbm %s2065_s9, 1024 }
  0x5d   : > { %s362_s20 = sshll.u32 %s1686_s17, 4  ;;  %p1578_p5 = scmp.ne.s32.totalorder %s2065_s9, %s1577_s30  ;;  %s363_s20 = int_to_ptr.vmem [resolvable:$true] %s362_s20 }
  0x5e   : > { %p1584_p3 = scmp.lt.u32.totalorder %s1577_s30, %s2065_s9 }
  0x5f   : > { %p1580_p10 = pnand %p1578_p5, %p1826_p0 }
  0x61   : > { %p1581_p2 = pneg %p1580_p10 }
  0x63   : > { %p1586_p4 = pnand %p1584_p3, %p1581_p2 }
  0x65   : > { %1589 = shalt.err (!%p1586_p4)
}
  0x66   : > { %s1590_s22 = scalar_lea.vmem %s363_s20, 1024  ;;  %p1598_p13 = scmp.lt.s32.totalorder %s363_s20, %s363_s20 }
  0x67   : > { %p1591_p7 = scmp.ne.s32.totalorder %s363_s20, %s1590_s22  ;;  %p1599_p1 = scmp.lt.s32.totalorder %s1590_s22, %s1590_s22 }
  0x69   : > { %p1593_p8 = pnand %p1591_p7, %p1826_p0  ;;  %p1600_p6 = por %p1599_p1, %p1598_p13 }
  0x6b   : > { %p1594_p11 = pneg %p1593_p8 }
  0x6d   : > { %p1601_p9 = pnand %p1600_p6, %p1594_p11 }
  0x6f   : > { %1604 = shalt.err (!%p1601_p9)
}
  0x70   : > { %1396 = dma.hbm_to_vmem [thread:$0]  (!%p1810_p12), %s2065_s9, 1024, %s363_s20, [#allocation9], %s1684_s24, %s1684_s24, %s1685_s26  }
  0x71   : > { %p2090_p5 = scmp.ne.s32.totalorder %s2087_s29, 0 }
  0x72   : > { %p2091_p0 = scmp.eq.s32.totalorder (!%p2090_p5), %s1772_s21, 0 }
  0x73   : > { %395 = sbr.rel (%p2090_p5) target bundleno = 1539 (0x603), region = 64 }
  0x7a   : > { %1650 = dma.done.wait (%p2091_p0), [#allocation3], 1024   ;;  %p2092_p10 = pmov %p2091_p0 }
  0x7b   : > { %p2093_p2 = pmov %p2091_p0 }
  0x7c   : > { %1652 = vsyncadd (%p2092_p10), [#allocation3], 4294966272 }
  0x7d   : > { %1654 = dma.done.wait (%p2093_p2), [#allocation6], 2048   ;;  %p2094_p3 = pmov %p2091_p0 }
  0x7e   : > { %p2095_p4 = pmov %p2091_p0 }
  0x7f   : > { %1656 = vsyncadd (%p2094_p3), [#allocation6], 4294965248 }
  0x80   : > { %1658 = dma.done.wait (%p2095_p4), [#allocation9], 1024   ;;  %p2096_p12 = pmov %p2091_p0 }
  0x81   : > { %p450_p7 = scmp.lt.s32.totalorder %s1772_s21, 1  ;;  %v1687_v0 = vmov 0.0   ;;  %vm1688_vm0 = vmmov 0   ;;  %vm470_vm1 = vcmask 1043456   ;;  %vm462_vm2 = vcmask 31744   ;;  %v1453_v26 = vld [vmem:[#allocation2] sm:$0xff]  }
  0x82   : > { %1660 = vsyncadd (%p2096_p12), [#allocation9], 4294966272  ;;  %1281 = vmatprep.subr.mxu0 %v1687_v0  ;;  %1286 = vmatprep.subr.bf16.mxu1 %v1687_v0  ;;  %v460_v2 = vld [vmem:[%s2059_s3] sm:$0xf]  ;;  %v1689_v5 = vmov 3   ;;  %v574_v17 = vlaneseq  ;;  %v1454_v27 = vld [vmem:[#allocation2 + $0x8] sm:$0xff]  }
  0x83   : > { %s1937_s23 = scalar_select %p450_p7, %s1772_s21, 1  ;;  %1283 = vmatprep.mubr.msk.f32.mxu0 %vm1688_vm0, %v1687_v0  ;;  %1302 = vmatprep.mubr.msk.bf16.mxu1 %vm1688_vm0, %v1687_v0  ;;  %v1203_v10 = vld [vmem:[%s2060_s4] ss:$0 sm:$0xff]  ;;  %v1455_v28 = vld [vmem:[#allocation2 + $0x10] sm:$0xff]   ;;  %v1456_v41 = vld [vmem:[#allocation2 + $0x18] sm:$0xff]  }
  0x84   : > { %1282 = vmatpush3.msk.msra.mxu0 %vm470_vm1, %v460_v2  ;;  %1451 = vset.pattern.permute.xlu0 %v1689_v5  ;;  %v1204_v15 = vld [vmem:[%s2061_s5] ss:$0 sm:$0xff]  ;;  %v575_v20 = vand.u32 127, %v574_v17  ;;  %v1458_v44 = vld [vmem:[#allocation2 + $0x28] sm:$0xff]   ;;  %v1459_v45 = vld [vmem:[#allocation2 + $0x30] sm:$0xff]   ;;  %s2097_s30 = sld [smem:[#allocation21_spill]] }
  0x85   : > { %s1199_s29 = sshll.u32 %s1937_s23, 3  ;;  %1306 = vmatprep.subr.bf16.mxu0 %v1687_v0  ;;  %1452 = vset.pattern.permute.xlu1 %v1689_v5  ;;  %v1457_v43 = vld [vmem:[#allocation2 + $0x20] sm:$0xff]   ;;  %v1460_v46 = vld [vmem:[#allocation2 + $0x38] sm:$0xff]   ;;  %v1463_v48 = vld [vmem:[#allocation7 + $0x8] sm:$0xff]   ;;  %s1200_s16 = sshll.u32 %s1937_s23, 2 }
  0x86   : > { %s453_s26 = scalar_lea.vmem %s2056_s0, %s1199_s29  ;;  %1287 = vmatpush3.bf16.msra.mxu1 %v1453_v26  ;;  %v1461_v47 = vld [vmem:[#allocation7] sm:$0xff]   ;;  %v1465_v49 = vld [vmem:[#allocation7 + $0x10] sm:$0xff]   ;;  %v1467_v50 = vld [vmem:[#allocation7 + $0x18] sm:$0xff]   ;;  %s457_s22 = scalar_lea.vmem %s2057_s1, %s1200_s16 }
  0x87   : > { %v459_v1 = vld [vmem:[%s453_s26] sm:$0xff]  ;;  %1288 = vmatprep.subr.bf16.mxu1 %v1687_v0  ;;  %v1471_v52 = vld [vmem:[#allocation7 + $0x28] sm:$0xff]   ;;  %v1473_v53 = vld [vmem:[#allocation7 + $0x30] sm:$0xff]   ;;  %s447_s23 = sand.u32 1, %s1671_s18   ;;  %s1240_s26 = sshll.u32 %s1772_s21, 7 }
  0x88   : > { %v461_v3 = vmul.f32 %v459_v1, %v459_v1  ;;  %1284 = vmatmul.mubr.msk.f32.vlgmr.msra.gmra.mrb[0].mxu0 %vm462_vm2, %v459_v1  ;;  %563 = vperm.xlu1 %1452, %v459_v1   ;;  %v1469_v51 = vld [vmem:[#allocation7 + $0x20] sm:$0xff]   ;;  %v1475_v54 = vld [vmem:[#allocation7 + $0x38] sm:$0xff]   ;;  %s1198_s29 = sshll.u32 %s447_s23, 3  ;;  %s1061_s16 = scalar_lea.sflag [#allocation4], %s447_s23 }
  0x89   : > { %1322 = vmatprep.mubr.msk.bf16.mxu0 %vm1688_vm0, %v1687_v0  ;;  %1307 = vmatpush3.bf16.msra.mxu0 %v1461_v47  ;;  %v1462_v1 = vld [vmem:[#allocation5] sm:$0xff]   ;;  %v1468_v5 = vld [vmem:[#allocation5 + $0x18] sm:$0xff]   ;;  %s449_s17 = scalar_lea.vmem [#allocation10], %s1198_s29  ;;  %p2098_p11 = scmp.ne.s32.totalorder %s2084_s27, 0 }
  0x8a   : > { %v463_v4 = vsel %vm462_vm2, %v461_v3, 0.0  ;;  %1289 = vmatpush3.bf16.msra.mxu1 %v1454_v27  ;;  %1308 = vmatprep.subr.bf16.mxu0 %v1687_v0  ;;  %s1074_s20 = sshll.u32 %s449_s17, 4  ;;  %s2014_s14 = scalar_lea.hbm %s2097_s30, %s1240_s26  ;;  %s2016_s20 = int_to_ptr.vmem [resolvable:$true] %s1074_s20 }
  0x8b   : > { %464 = vadd.xlane.f32.xlu0 %v463_v4  ;;  %1290 = vmatprep.subr.bf16.mxu1 %v1687_v0  ;;  %v1466_v4 = vld [vmem:[#allocation5 + $0x10] sm:$0xff]   ;;  %s1605_s21 = scalar_lea.vmem %s2016_s20, 128  ;;  %s1690_s19 = smov [#allocation10]  }
  0x8c   : > { %p1606_p8 = scmp.ne.s32.totalorder %s2016_s20, %s1605_s21  ;;  %s1609_s12 = sshll.u32 %s1690_s19, 4  ;;  %s1610_s12 = int_to_ptr.vmem [resolvable:$false] %s1609_s12 }
  0x8d   : > { %1309 = vmatpush3.bf16.msra.mxu0 %v1463_v48  ;;  %p1612_p6 = scmp.lt.s32.totalorder %s2016_s20, %s1610_s12 }
  0x8e   : > { %1291 = vmatpush3.bf16.msra.mxu1 %v1455_v28  ;;  %1310 = vmatprep.subr.bf16.mxu0 %v1687_v0  ;;  %p1607_p13 = pnand %p1606_p8, %p2098_p11 }
  0x8f   : > { %1292 = vmatprep.subr.bf16.mxu1 %v1687_v0 }
  0x90   : > { %p1608_p1 = pneg %p1607_p13 }
  0x91   : > { %1311 = vmatpush3.bf16.msra.mxu0 %v1465_v49 }
  0x92   : > { %1293 = vmatpush3.bf16.msra.mxu1 %v1456_v41  ;;  %1312 = vmatprep.subr.bf16.mxu0 %v1687_v0 }
  0x93   : > { %1294 = vmatprep.subr.bf16.mxu1 %v1687_v0 }
  0x95   : > { %1313 = vmatpush3.bf16.msra.mxu0 %v1467_v50 }
  0x96   : > { %1295 = vmatpush3.bf16.msra.mxu1 %v1457_v43  ;;  %1314 = vmatprep.subr.bf16.mxu0 %v1687_v0 }
  0x97   : > { %1296 = vmatprep.subr.bf16.mxu1 %v1687_v0 }
  0x99   : > { %1315 = vmatpush3.bf16.msra.mxu0 %v1469_v51 }
  0x9a   : > { %1297 = vmatpush3.bf16.msra.mxu1 %v1458_v44  ;;  %1316 = vmatprep.subr.bf16.mxu0 %v1687_v0 }
  0x9b   : > { %1298 = vmatprep.subr.bf16.mxu1 %v1687_v0 }
  0x9d   : > { %1317 = vmatpush3.bf16.msra.mxu0 %v1471_v52 }
  0x9e   : > { %1299 = vmatpush3.bf16.msra.mxu1 %v1459_v45  ;;  %1318 = vmatprep.subr.bf16.mxu0 %v1687_v0 }
  0x9f   : > { %1300 = vmatprep.subr.bf16.mxu1 %v1687_v0 }
  0xa1   : > { %1319 = vmatpush3.bf16.msra.mxu0 %v1473_v53 }
  0xa2   : > { %1301 = vmatpush3.bf16.msra.mxu1 %v1460_v46  ;;  %1320 = vmatprep.subr.bf16.mxu0 %v1687_v0 }
  0xa3   : > { %1326 = vmatprep.subr.bf16.mxu1 %v1687_v0 }
  0xa5   : > { %1321 = vmatpush3.bf16.msra.mxu0 %v1475_v54 }
  0xa6   : > { %1346 = vmatprep.subr.bf16.mxu0 %v1687_v0 }
 0x107   : > { %v564_v16 = vpop.permute.xlu1 %563 }
 0x108   : > { %vm572_vm3 = vcmp.eq.f32.partialorder %v564_v16, %v1204_v15  ;;  %v1481_v15 = vld [vmem:[#allocation8 + $0x20] sm:$0xff]   ;;  %v1482_v16 = vld [vmem:[#allocation8 + $0x28] sm:$0xff]  }
 0x118   : > { %v465_v6 = vpop.xlane.xlu0 %464 }
 0x119   : > { %v466_v7 = vsub.f32 %v465_v6, %v461_v3  ;;  %v1464_v3 = vld [vmem:[#allocation5 + $0x8] sm:$0xff]   ;;  %v1470_v6 = vld [vmem:[#allocation5 + $0x20] sm:$0xff]  }
 0x11b   : > { %547 = vperm.xlu0 %1451, %v466_v7   ;;  %v1472_v7 = vld [vmem:[#allocation5 + $0x28] sm:$0xff]  }
 0x15b   : > { %v540_v8 = vpop.f32.mrb[0].mxu0 }
 0x15c   : > { %v1285_v9 = vpop.f32.mrb[1].mxu0  ;;  %v557_v11 = vmul.f32 2.0, %v540_v8  ;;  %v1474_v8 = vld [vmem:[#allocation5 + $0x30] sm:$0xff]  }
 0x15d   : > { %v1476_v9 = vld [vmem:[#allocation5 + $0x38] sm:$0xff]  }
 0x19a   : > { %v548_v12 = vpop.permute.xlu0 %547 }
 0x19b   : > { %v556_v13 = vadd.f32 %v1203_v10, %v548_v12  ;;  %v745_v10 = vld [vmem:[%s457_s22] sm:$0xf]  ;;  %v1478_v12 = vld [vmem:[#allocation8 + $0x8] sm:$0xff]   ;;  %s1611_s22 = scalar_lea.vmem %s1610_s12, 256 }
 0x19c   : > { %1323 = vmatmul.mubr.bf16.vlgmr.msra.gmra.mrb[4].mxu0 %v745_v10  ;;  %p1613_p9 = scmp.lt.s32.totalorder %s1611_s22, %s1605_s21 }
 0x19d   : > { %v558_v14 = vsub.f32 %v556_v13, %v557_v11  ;;  %1362 = vmatprep.mubr.msk.bf16.mxu0 %vm1688_vm0, %v1687_v0  ;;  %v1477_v11 = vld [vmem:[#allocation8] sm:$0xff]   ;;  %v1479_v13 = vld [vmem:[#allocation8 + $0x10] sm:$0xff]  }
 0x19e   : > { %1347 = vmatpush3.bf16.msra.mxu0 %v1477_v11  ;;  %p1614_p5 = por %p1613_p9, %p1612_p6 }
 0x19f   : > { %v559_v18 = vmax.f32 %v558_v14, 0.0  ;;  %1348 = vmatprep.subr.bf16.mxu0 %v1687_v0  ;;  %v1480_v14 = vld [vmem:[#allocation8 + $0x18] sm:$0xff]  }
 0x1a0   : > { %p1615_p0 = pnand %p1614_p5, %p1608_p1 }
 0x1a1   : > { %v560_v19 = vadd.f32 1e-20, %v559_v18 }
 0x1a2   : > { %1349 = vmatpush3.bf16.msra.mxu0 %v1478_v12 }
 0x1a3   : > { %v573_v21 = vsel %vm572_vm3, %v560_v19, 1e+30  ;;  %1350 = vmatprep.subr.bf16.mxu0 %v1687_v0 }
 0x1a4   : > { %v577_v22 = vand.u32 4294967168, %v573_v21 }
 0x1a6   : > { %v578_v23 = vor.u32 %v577_v22, %v575_v20  ;;  %1351 = vmatpush3.bf16.msra.mxu0 %v1479_v13 }
 0x1a7   : > { %1352 = vmatprep.subr.bf16.mxu0 %v1687_v0 }
 0x1a8   : > { %580 = vmin.xlane.f32.xlu1 %v578_v23 }
 0x1aa   : > { %1353 = vmatpush3.bf16.msra.mxu0 %v1480_v14 }
 0x1ab   : > { %1354 = vmatprep.subr.bf16.mxu0 %v1687_v0 }
 0x1ae   : > { %1355 = vmatpush3.bf16.msra.mxu0 %v1481_v15 }
 0x1af   : > { %1356 = vmatprep.subr.bf16.mxu0 %v1687_v0 }
 0x1b2   : > { %1357 = vmatpush3.bf16.msra.mxu0 %v1482_v16 }
 0x1b3   : > { %1358 = vmatprep.subr.bf16.mxu0 %v1687_v0 }
 0x235   : > { %v581_v24 = vpop.xlane.xlu1 %580 }
 0x236   : > { %vm582_vm4 = vcmp.eq.f32.partialorder %v578_v23, %v581_v24  ;;  %v584_v29 = vand.u32 4294967168, %v581_v24 }
 0x237   : > { %v592_v25 = vsel %vm582_vm4, 1e+38, %v578_v23 }
 0x238   : > { %593 = vmin.xlane.f32.xlu1 %v592_v25  ;;  %v587_v30 = vmax.f32 %v584_v29, 1e-16  ;;  %vm586_vm6 = vcmp.lt.f32.partialorder %v584_v29, 1e+29  ;;  %v1483_v29 = vld [vmem:[#allocation8 + $0x30] sm:$0xff]  }
 0x239   : > { %1359 = vmatpush3.bf16.msra.mxu0 %v1483_v29 }
 0x23a   : > { %1485 = vrcp.f32 %v587_v30  ;;  %1360 = vmatprep.subr.bf16.mxu0 %v1687_v0  ;;  %v1484_v30 = vld [vmem:[#allocation8 + $0x38] sm:$0xff]  }
 0x23d   : > { %1361 = vmatpush3.bf16.msra.mxu0 %v1484_v30 }
 0x244   : > { %v1486_v35 = vpop.eup %1485 }
 0x245   : > { %v589_v36 = vsel %vm586_vm6, %v1486_v35, 0.0 }
 0x246   : > { %v591_v38 = vsel %vm582_vm4, %v589_v36, 0.0 }
 0x2c5   : > { %v594_v31 = vpop.xlane.xlu1 %593 }
 0x2c6   : > { %v597_v32 = vand.u32 4294967168, %v594_v31  ;;  %vm595_vm5 = vcmp.eq.f32.partialorder %v592_v25, %v594_v31 }
 0x2c7   : > { %v1963_v33 = vsel %vm595_vm5, 1e+38, %v592_v25  ;;  %v844_v25 = vpop.f32.mrb[4].mxu0 }
 0x2c8   : > { %v600_v34 = vmax.f32 %v597_v32, 1e-16  ;;  %607 = vmin.xlane.f32.xlu1 %v1963_v33  ;;  %vm599_vm7 = vcmp.lt.f32.partialorder %v597_v32, 1e+29  ;;  %v1324_v26 = vpop.f32.mrb[5].mxu0 }
 0x2c9   : > { %v847_v27 = vpop.f32.mrb[6].mxu0  ;;  %v1229_v32 = vld [vmem:[%s2064_s8] ss:$0 sm:$0xff] }
 0x2ca   : > { %1487 = vrcp.f32 %v600_v34  ;;  %v1325_v28 = vpop.f32.mrb[7].mxu0 }
 0x2d4   : > { %v1488_v37 = vpop.eup %1487 }
 0x2d5   : > { %v602_v39 = vsel %vm599_vm7, %v1488_v37, 0.0 }
 0x2d6   : > { %v603_v40 = vadd.f32 %v602_v39, %v591_v38  ;;  %v605_v59 = vadd.f32 %v602_v39, %v589_v36 }
 0x2d8   : > { %v604_v42 = vsel %vm595_vm5, %v603_v40, %v591_v38 }
 0x355   : > { %v608_v55 = vpop.xlane.xlu1 %607 }
 0x356   : > { %v611_v56 = vand.u32 4294967168, %v608_v55  ;;  %vm609_vm9 = vcmp.eq.f32.partialorder %v1963_v33, %v608_v55 }
 0x358   : > { %v614_v57 = vmax.f32 %v611_v56, 1e-16  ;;  %vm613_vm8 = vcmp.lt.f32.partialorder %v611_v56, 1e+29 }
 0x35a   : > { %1489 = vrcp.f32 %v614_v57 }
 0x364   : > { %v1490_v58 = vpop.eup %1489 }
 0x365   : > { %v616_v60 = vsel %vm613_vm8, %v1490_v58, 0.0 }
 0x366   : > { %v617_v61 = vadd.f32 %v616_v60, %v604_v42  ;;  %v619_v62 = vadd.f32 %v616_v60, %v605_v59 }
 0x368   : > { %v618_v63 = vsel %vm609_vm9, %v617_v61, %v604_v42  ;;  %v725_v17 = vmax.f32 %v619_v62, 1e-30 }
 0x369   : > { %v620_v2 = vpack.c.bf16 %v618_v63, %v618_v63 }
 0x36a   : > { %1491 = vrcp.f32 %v725_v17 }
 0x36b   : > { %1303 = vmatmul.mubr.bf16.vlgmr.msra.gmra.mrb[0].mxu1 %v620_v2 }
 0x36c   : > { %1327 = vmatpush3.bf16.msra.mxu1 %v1462_v1  ;;  %1342 = vmatprep.mubr.msk.bf16.mxu1 %vm1688_vm0, %v1687_v0 }
 0x36d   : > { %1328 = vmatprep.subr.bf16.mxu1 %v1687_v0 }
 0x370   : > { %1329 = vmatpush3.bf16.msra.mxu1 %v1464_v3 }
 0x371   : > { %1330 = vmatprep.subr.bf16.mxu1 %v1687_v0 }
 0x374   : > { %1331 = vmatpush3.bf16.msra.mxu1 %v1466_v4  ;;  %v1492_v18 = vpop.eup %1491 }
 0x375   : > { %1332 = vmatprep.subr.bf16.mxu1 %v1687_v0 }
 0x378   : > { %1333 = vmatpush3.bf16.msra.mxu1 %v1468_v5 }
 0x379   : > { %1334 = vmatprep.subr.bf16.mxu1 %v1687_v0 }
 0x37c   : > { %1335 = vmatpush3.bf16.msra.mxu1 %v1470_v6 }
 0x37d   : > { %1336 = vmatprep.subr.bf16.mxu1 %v1687_v0 }
 0x380   : > { %1337 = vmatpush3.bf16.msra.mxu1 %v1472_v7 }
 0x381   : > { %1338 = vmatprep.subr.bf16.mxu1 %v1687_v0 }
 0x384   : > { %1339 = vmatpush3.bf16.msra.mxu1 %v1474_v8 }
 0x385   : > { %1340 = vmatprep.subr.bf16.mxu1 %v1687_v0  ;;  %v1230_v0 = vld [vmem:[%s2066_s10] ss:$0 sm:$0xff] }
 0x388   : > { %1341 = vmatpush3.bf16.msra.mxu1 %v1476_v9 }
 0x43e   : > { %v719_v19 = vpop.f32.mrb[0].mxu1 }
 0x43f   : > { %v727_v20 = vmul.f32 %v1492_v18, %v719_v19  ;;  %v1304_v21 = vpop.f32.mrb[1].mxu1 }
 0x440   : > { %v722_v22 = vpop.f32.mrb[2].mxu1 }
 0x441   : > { %v728_v23 = vpack.c.bf16 %v727_v20, %v727_v20  ;;  %v1305_v24 = vpop.f32.mrb[3].mxu1 }
 0x443   : > { %1343 = vmatmul.mubr.bf16.vlgmr.msra.gmra.mrb[4].mxu1 %v728_v23 }
 0x516   : > { %v932_v31 = vpop.f32.mrb[4].mxu1 }
 0x517   : > { %v933_v33 = vadd.f32 %v932_v31, %v844_v25  ;;  %v1344_v34 = vpop.f32.mrb[5].mxu1 }
 0x518   : > { %v935_v35 = vpop.f32.mrb[6].mxu1 }
 0x519   : > { %v945_v36 = vadd.f32 %v1229_v32, %v933_v33  ;;  %v1345_v37 = vpop.f32.mrb[7].mxu1 }
 0x51b   : > { %v946_v38 = vmax.f32 %v945_v36, 0.0 }
 0x51d   : > { %v947_v39 = vpack.c.bf16 %v946_v38, %v946_v38 }
 0x51f   : > { %1363 = vmatmul.mubr.bf16.vlgmr.msra.gmra.mrb[8].mxu0 %v947_v39 }
 0x5f2   : > { %v1053_v40 = vpop.f32.mrb[8].mxu0 }
 0x5f3   : > { %v1054_v41 = vadd.f32 %v1230_v0, %v1053_v40  ;;  %v1364_v42 = vpop.f32.mrb[9].mxu0 }
 0x5f4   : > { %v1056_v43 = vpop.f32.mrb[10].mxu0 }
 0x5f5   : > { %1059 = vst [vmem:[%s449_s17] sm:$0xff] %v1054_v41  ;;  %v1365_v44 = vpop.f32.mrb[11].mxu0 }
 0x5f6   : > { %1618 = shalt.err (!%p1615_p0)
}
 0x5f7   : > { %s1619_s15 = scalar_lea.hbm %s2014_s14, 128  ;;  %s1623_s29 = scalar_lea.hbm %s2097_s30, 256 }
 0x5f8   : > { %p1620_p10 = scmp.ne.s32.totalorder %s2014_s14, %s1619_s15  ;;  %p1624_p4 = scmp.lt.u32.totalorder %s2014_s14, %s2097_s30 }
 0x5f9   : > { %p1625_p12 = scmp.lt.u32.totalorder %s1623_s29, %s1619_s15  ;;  %p1627_p8 = scmp.lt.u32.totalorder %s1619_s15, %s2014_s14 }
 0x5fa   : > { %p1621_p2 = pnand %p1620_p10, %p2098_p11 }
 0x5fb   : > { %p1626_p7 = por %p1625_p12, %p1624_p4 }
 0x5fc   : > { %p1622_p3 = pneg %p1621_p2 }
 0x5fd   : > { %p1628_p13 = por %p1627_p8, %p1626_p7 }
 0x5ff   : > { %p1629_p1 = pnand %p1628_p13, %p1622_p3 }
 0x601   : > { %1632 = shalt.err (!%p1629_p1)
}
 0x602   : > { %1382 = dma.vmem_to_hbm [thread:$0]  (%p2098_p11), %s2016_s20, 128, %s2014_s14, %s1061_s16  }
 0x603 PF: > { %s2099_s26 = sld [smem:[#allocation17_spill]]  ;;  %s2100_s17 = sld [smem:[#allocation15_spill]] }
 0x604   : > { %s2101_s28 = sld [smem:[#allocation20_spill]] }
 0x609   : > { %p1409_p6 = scmp.ge.s32.totalorder %s2099_s26, 2  ;;  %s1086_s25 = sand.u32 1, %s2100_s17  }
 0x60a   : > { %p2102_p9 = scmp.ne.s32.totalorder %s2101_s28, 0  ;;  %s1087_s21 = scalar_lea.sflag [#allocation4], %s1086_s25 }
 0x60c   : > { %p1398_p5 = pnand %p1409_p6, %p2102_p9 }
 0x60e   : > { %1662 = dma.done.wait (!%p1398_p5), %s1087_s21, 128  }
 0x60f   : > { %1664 = vsyncadd (!%p1398_p5), %s1087_s21, 4294967168  ;;  %s2103_s20 = sld [smem:[#allocation18_spill]]  ;;  %s2104_s19 = sld [smem:[#allocation16_spill]] }
 0x610   : > { %s2105_s12 = sld [smem:[#allocation19_spill]]  ;;  %s2106_s17 = smov %s1671_s18 }
 0x615   : > { %p24_p0 = scmp.ge.s32.totalorder %s2103_s20, 4   ;;  %s2107_s18 = smov %s2104_s19 }
 0x616   : > { %s2108_s19 = smov %s2105_s12 }
 0x617   :  { %26 = sbr.rel (!%p24_p0) target bundleno = 8 (0x8), region = 119 }
 0x61e   :  { %1092 = vsyncpa [#allocation3], 1 }
 0x61f   :  { %1094 = vsyncpa [#allocation3 + $0x1], 1 }
 0x620   :  { %1095 = vsyncpa [#allocation6], 1 }
 0x621   :  { %1096 = vsyncpa [#allocation9], 1 }
 0x622   :  { %1097 = vsyncpa [#allocation4], 1 }
 0x623   :  { %1099 = vsyncpa [#allocation4 + $0x1], 1 }

</bundles_post_ra>
